<compile_context>
chip_gen: v7x
topology: tpu7x:2x2x1
jax: 0.10.0
libtpu: 0.0.40
codegen_flags: <defaults>
</compile_context>

<pallas_src>
import functools
from typing import List, Sequence, Tuple

import jax
import jax.numpy as jnp
from jax.experimental import pallas as pl
from jax.experimental.pallas import tpu as pltpu


def _round_up(x: int, m: int) -> int:
    return ((x + m - 1) // m) * m


# ----------------------------- Pallas kernel ------------------------------ #

def _make_mlp_kernel(num_layers: int):
    """Fused MLP kernel: x -> [Linear, ReLU]*(L-1) -> Linear -> out."""

    def kernel(x_ref, *refs):
        out_ref = refs[-1]
        h = x_ref[...]                                   # (tile_b, obs_dim) f32
        for l in range(num_layers):
            w = refs[2 * l][...]                         # (d_in, d_out)
            b = refs[2 * l + 1][...]                     # (1, d_out)
            h = jnp.dot(h, w, preferred_element_type=jnp.float32) + b
            if l < num_layers - 1:
                h = jnp.maximum(h, 0.0)                  # hidden ReLU only
        out_ref[...] = h.astype(out_ref.dtype)

    return kernel


@functools.lru_cache(maxsize=None)
def _build_call(batch_padded: int, tile_b: int, dims: Tuple[int, ...]):
    """Build (and cache) the pallas_call for a given static shape signature."""
    num_layers = len(dims) - 1
    grid = (batch_padded // tile_b,)

    in_specs = [pl.BlockSpec((tile_b, dims[0]), lambda i: (i, 0))]   # x tile
    for l in range(num_layers):
        d_in, d_out = dims[l], dims[l + 1]
        # Full-array blocks with a constant index -> weights stay VMEM-resident
        # across all grid steps (tiny: hidden sizes are O(10^1..10^2)).
        in_specs.append(pl.BlockSpec((d_in, d_out), lambda i: (0, 0)))  # W_l
        in_specs.append(pl.BlockSpec((1, d_out), lambda i: (0, 0)))     # b_l

    out_specs = pl.BlockSpec((tile_b, dims[-1]), lambda i: (i, 0))

    return pl.pallas_call(
        _make_mlp_kernel(num_layers),
        out_shape=jax.ShapeDtypeStruct((batch_padded, dims[-1]), jnp.float32),
        grid=grid,
        in_specs=in_specs,
        out_specs=out_specs,
        compiler_params=pltpu.CompilerParams(
            dimension_semantics=("parallel",)),      # shards batch tiles on v7x
    )


# ----------------------------- Python wrapper ------------------------------ #

def init_obs_encoder(key, obs_dim: int, hidden_sizes: Sequence[int],
                     out_dim: int = 1) -> List[Tuple[jnp.ndarray, jnp.ndarray]]:
    """Host-side parameter init (uniform(-1/sqrt(fan_in), 1/sqrt(fan_in)),
    equivalent in scale to torch's kaiming_uniform_(a=sqrt(5)) default)."""
    dims = [obs_dim, *list(hidden_sizes), out_dim]
    params = []
    for l in range(len(dims) - 1):
        key, kw, kb = jax.random.split(key, 3)
        bound = 1.0 / float(dims[l]) ** 0.5
        w = jax.random.uniform(kw, (dims[l], dims[l + 1]), jnp.float32,
                               -bound, bound)
        b = jax.random.uniform(kb, (1, dims[l + 1]), jnp.float32, -bound, bound)
        params.append((w, b))
    return params


@jax.jit
def obs_encoder_forward(params, obs):
    """Equivalent of ObsEncoder.forward(obs)."""
    squeeze_batch = obs.ndim == 1
    if squeeze_batch:
        obs = obs[None, :]
    batch, obs_dim = obs.shape
    dims = tuple([obs_dim] + [int(w.shape[1]) for (w, _) in params])
    out_dim = dims[-1]

    # Batch tiling: pad to a multiple of the tile so every block is full
    # (sublane-aligned); 256-row tiles for big batches amortize grid overhead.
    if batch <= 256:
        tile_b = _round_up(batch, 8)
    else:
        tile_b = 256
    batch_padded = _round_up(batch, tile_b)

    x = obs.astype(jnp.float32)
    if batch_padded != batch:
        x = jnp.pad(x, ((0, batch_padded - batch), (0, 0)))

    flat_params = []
    for (w, b) in params:
        flat_params.append(w.astype(jnp.float32))
        flat_params.append(b.astype(jnp.float32).reshape(1, -1))

    call = _build_call(batch_padded, tile_b, dims)
    out = call(x, *flat_params)[:batch]

    if out_dim == 1:
        out = out[..., 0]            # .squeeze(-1) branch of the module
    if squeeze_batch:
        out = out[0]
    return out


# ------------------------- pure-JAX reference (check) ---------------------- #

def _ref_forward(params, obs):
    h = obs.astype(jnp.float32)
    for idx, (w, b) in enumerate(params):
        h = h @ w + b.reshape(-1)
        if idx < len(params) - 1:
            h = jnp.maximum(h, 0.0)
    if params[-1][0].shape[1] == 1:
        h = h[..., 0]
    return h


# ---------------------------------- main ----------------------------------- #

if __name__ == "__main__":
    key = jax.random.PRNGKey(0)
    obs_dim = 16
    act_dim = 4          # stored by the module but unused in forward
    hidden_sizes = (32, 32)
    batch = 6

    kp, kx = jax.random.split(key)
    obs = jax.random.normal(kx, (batch, obs_dim), jnp.float32)

    # out_dim == 1 path (output squeezed to (batch,))
    params1 = init_obs_encoder(kp, obs_dim, hidden_sizes, out_dim=1)
    out1 = obs_encoder_forward(params1, obs)
    jax.block_until_ready(out1)
    ref1 = _ref_forward(params1, obs)
    assert out1.shape == (batch,)
    assert jnp.allclose(out1, ref1, rtol=1e-5, atol=1e-5)

    # out_dim > 1 path (no squeeze)
    params3 = init_obs_encoder(jax.random.PRNGKey(1), obs_dim, hidden_sizes,
                               out_dim=3)
    out3 = obs_encoder_forward(params3, obs)
    jax.block_until_ready(out3)
    ref3 = _ref_forward(params3, obs)
    assert out3.shape == (batch, 3)
    assert jnp.allclose(out3, ref3, rtol=1e-5, atol=1e-5)

    # 1-D observation (single obs, no batch dim)
    single = obs_encoder_forward(params1, obs[0])
    jax.block_until_ready(single)
    assert single.shape == ()
    assert jnp.allclose(single, ref1[0], rtol=1e-5, atol=1e-5)

    print("KERNEL_OK")
</pallas_src>

<mosaic_0001>
module attributes {stable_mosaic.version = 11 : i64} {
  func.func @kernel(%arg0: i32, %arg1: memref<8x16xf32, #tpu.memory_space<vmem>>, %arg2: memref<16x32xf32, #tpu.memory_space<vmem>>, %arg3: memref<1x32xf32, #tpu.memory_space<vmem>>, %arg4: memref<32x32xf32, #tpu.memory_space<vmem>>, %arg5: memref<1x32xf32, #tpu.memory_space<vmem>>, %arg6: memref<32x1xf32, #tpu.memory_space<vmem>>, %arg7: memref<1x1xf32, #tpu.memory_space<vmem>>, %arg8: memref<8x1xf32, #tpu.memory_space<vmem>>) attributes {dimension_semantics = [#tpu.dimension_semantics<parallel>], iteration_bounds = array<i64: 1>, scalar_prefetch = 0 : i64, scratch_operands = 0 : i64, tpu.core_type = #tpu.core_type<tc>, window_params = [{transform_indices = @transform_0, window_bounds = array<i64: 8, 16>}, {pipeline_mode = #tpu.pipeline_mode<synchronous>, transform_indices = @transform_1, window_bounds = array<i64: 16, 32>}, {pipeline_mode = #tpu.pipeline_mode<synchronous>, transform_indices = @transform_2, window_bounds = array<i64: 1, 32>}, {pipeline_mode = #tpu.pipeline_mode<synchronous>, transform_indices = @transform_3, window_bounds = array<i64: 32, 32>}, {pipeline_mode = #tpu.pipeline_mode<synchronous>, transform_indices = @transform_4, window_bounds = array<i64: 1, 32>}, {pipeline_mode = #tpu.pipeline_mode<synchronous>, transform_indices = @transform_5, window_bounds = array<i64: 32, 1>}, {pipeline_mode = #tpu.pipeline_mode<synchronous>, transform_indices = @transform_6, window_bounds = array<i64: 1, 1>}, {transform_indices = @transform_7, window_bounds = array<i64: 8, 1>}]} {
    %c0 = arith.constant 0 : index
    %c0_0 = arith.constant 0 : index
    %0 = vector.load %arg1[%c0, %c0_0] : memref<8x16xf32, #tpu.memory_space<vmem>>, vector<8x16xf32>
    %c0_1 = arith.constant 0 : index
    %c0_2 = arith.constant 0 : index
    %1 = vector.load %arg2[%c0_1, %c0_2] : memref<16x32xf32, #tpu.memory_space<vmem>>, vector<16x32xf32>
    %c0_3 = arith.constant 0 : index
    %c0_4 = arith.constant 0 : index
    %2 = vector.load %arg3[%c0_3, %c0_4] : memref<1x32xf32, #tpu.memory_space<vmem>>, vector<1x32xf32>
    %cst = arith.constant dense<0.000000e+00> : vector<8x32xf32>
    %3 = tpu.matmul %0, %1, %cst {dimension_numbers = #tpu.dot_dimension_numbers<[1], [0], [0], [1], [0, 0, 1, 1], [], []>} : vector<8x16xf32>, vector<16x32xf32>, vector<8x32xf32> -> vector<8x32xf32>
    %4 = vector.broadcast %2 : vector<1x32xf32> to vector<8x32xf32>
    %5 = arith.addf %3, %4 : vector<8x32xf32>
    %cst_5 = arith.constant 0.000000e+00 : f32
    %6 = vector.broadcast %cst_5 : f32 to vector<8x32xf32>
    %7 = arith.maximumf %5, %6 : vector<8x32xf32>
    %c0_6 = arith.constant 0 : index
    %c0_7 = arith.constant 0 : index
    %8 = vector.load %arg4[%c0_6, %c0_7] : memref<32x32xf32, #tpu.memory_space<vmem>>, vector<32x32xf32>
    %c0_8 = arith.constant 0 : index
    %c0_9 = arith.constant 0 : index
    %9 = vector.load %arg5[%c0_8, %c0_9] : memref<1x32xf32, #tpu.memory_space<vmem>>, vector<1x32xf32>
    %cst_10 = arith.constant dense<0.000000e+00> : vector<8x32xf32>
    %10 = tpu.matmul %7, %8, %cst_10 {dimension_numbers = #tpu.dot_dimension_numbers<[1], [0], [0], [1], [0, 0, 1, 1], [], []>} : vector<8x32xf32>, vector<32x32xf32>, vector<8x32xf32> -> vector<8x32xf32>
    %11 = vector.broadcast %9 : vector<1x32xf32> to vector<8x32xf32>
    %12 = arith.addf %10, %11 : vector<8x32xf32>
    %cst_11 = arith.constant 0.000000e+00 : f32
    %13 = vector.broadcast %cst_11 : f32 to vector<8x32xf32>
    %14 = arith.maximumf %12, %13 : vector<8x32xf32>
    %c0_12 = arith.constant 0 : index
    %c0_13 = arith.constant 0 : index
    %15 = vector.load %arg6[%c0_12, %c0_13] : memref<32x1xf32, #tpu.memory_space<vmem>>, vector<32x1xf32>
    %c0_14 = arith.constant 0 : index
    %c0_15 = arith.constant 0 : index
    %16 = vector.load %arg7[%c0_14, %c0_15] : memref<1x1xf32, #tpu.memory_space<vmem>>, vector<1x1xf32>
    %cst_16 = arith.constant dense<0.000000e+00> : vector<8x1xf32>
    %17 = tpu.matmul %14, %15, %cst_16 {dimension_numbers = #tpu.dot_dimension_numbers<[1], [0], [0], [1], [0, 0, 1, 1], [], []>} : vector<8x32xf32>, vector<32x1xf32>, vector<8x1xf32> -> vector<8x1xf32>
    %18 = vector.broadcast %16 : vector<1x1xf32> to vector<8x1xf32>
    %19 = arith.addf %17, %18 : vector<8x1xf32>
    %c0_17 = arith.constant 0 : index
    %c0_18 = arith.constant 0 : index
    %20 = vector.load %arg8[%c0_17, %c0_18] : memref<8x1xf32, #tpu.memory_space<vmem>>, vector<8x1xf32>
    tpu.vector_store %arg8[%c0_17, %c0_18], %19 {strides = array<i32>} : memref<8x1xf32, #tpu.memory_space<vmem>>, vector<8x1xf32>,
    return
  }
  func.func @transform_0(%arg0: i32) -> (i32, i32) {
    %c0_i32 = arith.constant 0 : i32
    %c0_i32_0 = arith.constant 0 : i32
    return %arg0, %c0_i32 : i32, i32
  }
  func.func @transform_1(%arg0: i32) -> (i32, i32) {
    %c0_i32 = arith.constant 0 : i32
    %c0_i32_0 = arith.constant 0 : i32
    %c0_i32_1 = arith.constant 0 : i32
    return %c0_i32, %c0_i32_0 : i32, i32
  }
  func.func @transform_2(%arg0: i32) -> (i32, i32) {
    %c0_i32 = arith.constant 0 : i32
    %c0_i32_0 = arith.constant 0 : i32
    %c0_i32_1 = arith.constant 0 : i32
    return %c0_i32, %c0_i32_0 : i32, i32
  }
  func.func @transform_3(%arg0: i32) -> (i32, i32) {
    %c0_i32 = arith.constant 0 : i32
    %c0_i32_0 = arith.constant 0 : i32
    %c0_i32_1 = arith.constant 0 : i32
    return %c0_i32, %c0_i32_0 : i32, i32
  }
  func.func @transform_4(%arg0: i32) -> (i32, i32) {
    %c0_i32 = arith.constant 0 : i32
    %c0_i32_0 = arith.constant 0 : i32
    %c0_i32_1 = arith.constant 0 : i32
    return %c0_i32, %c0_i32_0 : i32, i32
  }
  func.func @transform_5(%arg0: i32) -> (i32, i32) {
    %c0_i32 = arith.constant 0 : i32
    %c0_i32_0 = arith.constant 0 : i32
    %c0_i32_1 = arith.constant 0 : i32
    return %c0_i32, %c0_i32_0 : i32, i32
  }
  func.func @transform_6(%arg0: i32) -> (i32, i32) {
    %c0_i32 = arith.constant 0 : i32
    %c0_i32_0 = arith.constant 0 : i32
    %c0_i32_1 = arith.constant 0 : i32
    return %c0_i32, %c0_i32_0 : i32, i32
  }
  func.func @transform_7(%arg0: i32) -> (i32, i32) {
    %c0_i32 = arith.constant 0 : i32
    %c0_i32_0 = arith.constant 0 : i32
    return %arg0, %c0_i32 : i32, i32
  }
}

</mosaic_0001>

<bundles_post_ra>
// kernel: obs_encoder_forward.1
= control target key start
LH: loop header
LB: loop body
LE: loop exit
PB: predicated region body
PF: predicated region fallthrough
CT: control target
= control target key end

     0   :  { %v355_v0 = vmov 0.0|0.0   ;;  %vm356_vm0 = vmmov 0   ;;  %v357_v3 = vmov 0.0   ;;  %vm38_vm1 = vcmask 130048   ;;  %s448_s1 = inlined_call_operand.vmem [shape: f32[16,32], index: 1, kind: input, shape index: {}]   ;;  %s449_s3 = inlined_call_operand.vmem [shape: f32[32,32], index: 3, kind: input, shape index: {}]   ;;  %s450_s0 = inlined_call_operand.vmem [shape: f32[8,16], index: 0, kind: input, shape index: {}]   ;;  %s451_s5 = inlined_call_operand.vmem [shape: f32[32,1], index: 5, kind: input, shape index: {}]   ;;  %s452_s2 = inlined_call_operand.vmem [shape: f32[1,32], index: 2, kind: input, shape index: {}]   ;;  %s453_s6 = inlined_call_operand.<no memory space> [shape: f32[1,1], index: 6, kind: input, shape index: {}]   ;;  %s454_s4 = inlined_call_operand.vmem [shape: f32[1,32], index: 4, kind: input, shape index: {}]   ;;  %s455_s7 = inlined_call_operand.vmem [shape: f32[8,1], index: 7, kind: output, shape index: {}]  }
   0x1   :  { %337 = vmatprep.subr.bf16.mxu0 %v355_v0  ;;  %v29_v1 = vld [vmem:[%s448_s1] sm:$0xff]  ;;  %v30_v2 = vld [vmem:[%s448_s1 + $0x8] sm:$0xff]  ;;  %312 = vmatprep.mubr.msk.f32.mxu0 %vm356_vm0, %v357_v3  ;;  %v115_v9 = vld [vmem:[%s449_s3 + $0x10] sm:$0xff]  ;;  %vm124_vm2 = vcmask 261120   ;;  %v12_v23 = vstv %s453_s6  ;;  %vm283_vm3 = vcmask 7168  }
   0x2   :  { %v338_v4 = vpack.c.bf16 %v30_v2, %v29_v1  ;;  %340 = vmatprep.subr.bf16.mxu1 %v355_v0  ;;  %v113_v5 = vld [vmem:[%s449_s3] sm:$0xff]  ;;  %v114_v6 = vld [vmem:[%s449_s3 + $0x8] sm:$0xff]  ;;  %323 = vmatprep.mubr.msk.f32.mxu1 %vm356_vm0, %v357_v3  ;;  %v116_v10 = vld [vmem:[%s449_s3 + $0x18] sm:$0xff]  ;;  %13 = vst [vmem:[#allocation2] sm:$0x1] %v12_v23 }
   0x3   :  { %v341_v7 = vpack.c.bf16 %v114_v6, %v113_v5  ;;  %v28_v8 = vld [vmem:[%s450_s0] sm:$0xff]  ;;  %v344_v11 = vpack.c.bf16 %v116_v10, %v115_v9  ;;  %v200_v13 = vld [vmem:[%s451_s5 + $0x8] sm:$0xff]  ;;  %v201_v20 = vld [vmem:[%s451_s5 + $0x10] sm:$0xff] }
   0x4   :  { %339 = vmatpush3.bf16.msra.mxu0 %v338_v4  ;;  %v199_v12 = vld [vmem:[%s451_s5] sm:$0xff]  ;;  %v202_v21 = vld [vmem:[%s451_s5 + $0x18] sm:$0xff] }
   0x5   :  { %342 = vmatpush3.bf16.msra.mxu1 %v341_v7  ;;  %346 = vmatprep.subr.bf16.mxu0 %v355_v0  ;;  %v347_v14 = vpack.c.bf16 %v200_v13, %v199_v12  ;;  %v289_v15 = vld [vmem:[%s452_s2] ss:$0 sm:$0xff]  ;;  %v350_v22 = vpack.c.bf16 %v202_v21, %v201_v20 }
   0x6   :  { %343 = vmatprep.subr.bf16.mxu1 %v355_v0  ;;  %v291_v24 = vld [vmem:[%s454_s4] ss:$0 sm:$0xff] }
   0x7   :  { %313 = vmatmul.mubr.msk.f32.vlgmr.msra.gmra.mrb[0].mxu0 %vm38_vm1, %v28_v8 }
   0x8   :  { %334 = vmatprep.mubr.msk.f32.mxu0 %vm356_vm0, %v357_v3  ;;  %348 = vmatpush3.bf16.msra.mxu0 %v347_v14 }
   0x9   :  { %345 = vmatpush3.bf16.msra.mxu1 %v344_v11  ;;  %349 = vmatprep.subr.bf16.mxu0 %v355_v0  ;;  %v293_v29 = vld [vmem:[#allocation2] ss:$0 sm:$0xff] }
   0xc   :  { %351 = vmatpush3.bf16.msra.mxu0 %v350_v22 }
  0xda   :  { %v108_v16 = vpop.f32.mrb[0].mxu0 }
  0xdb   :  { %v109_v17 = vadd.f32 %v289_v15, %v108_v16  ;;  %v314_v18 = vpop.f32.mrb[1].mxu0 }
  0xdd   :  { %v112_v19 = vmax.f32 %v109_v17, 0.0 }
  0xdf   :  { %324 = vmatmul.mubr.msk.f32.vlgmr.msra.gmra.mrb[0].mxu1 %vm124_vm2, %v112_v19 }
 0x1b2   :  { %v194_v25 = vpop.f32.mrb[0].mxu1 }
 0x1b3   :  { %v195_v26 = vadd.f32 %v291_v24, %v194_v25  ;;  %v325_v27 = vpop.f32.mrb[1].mxu1 }
 0x1b5   :  { %v198_v28 = vmax.f32 %v195_v26, 0.0 }
 0x1b7   :  { %335 = vmatmul.mubr.msk.f32.vlgmr.msra.gmra.mrb[2].mxu0 %vm124_vm2, %v198_v28 }
 0x28a   :  { %v279_v30 = vpop.f32.mrb[2].mxu0 }
 0x28b   :  { %v280_v31 = vadd.f32 %v293_v29, %v279_v30  ;;  %v336_v32 = vpop.f32.mrb[3].mxu0 }
 0x28d   :  { %284 = vst.msk [vmem:[%s455_s7] sm:$0xff] %vm283_vm3, %v280_v31 }

</bundles_post_ra>
